<compile_context>
chip_gen: v7x
topology: tpu7x:2x2x1
jax: 0.10.0
libtpu: 0.0.40
codegen_flags: <defaults>
</compile_context>

<pallas_src>
import jax
import jax.numpy as jnp
from jax.experimental import pallas as pl
from jax.experimental.pallas import tpu as pltpu


H2_PAD = 128  # layer-2 hidden width (32) zero-padded to one full lane width


def _mlp_kernel(x_ref, w1_ref, b1_ref, w2_ref, b2_ref, wh_ref, bh_ref, out_ref):
    # uint8 -> f32 -> bf16 is exact for values 0..255; the 1/255 scale is
    # folded into w1, so there is no per-element multiply over (tile_b, d_obs).
    x = x_ref[...].astype(jnp.float32).astype(jnp.bfloat16)

    # Linear(d_obs -> 128) + ReLU   (bf16 MXU, f32 accumulation)
    h1 = jnp.dot(x, w1_ref[...], preferred_element_type=jnp.float32) + b1_ref[...]
    h1 = jnp.maximum(h1, 0.0).astype(jnp.bfloat16)

    # Linear(128 -> 32), zero-padded to 128 lanes, + ReLU (lane-dense h2)
    h2 = jnp.dot(h1, w2_ref[...], preferred_element_type=jnp.float32) + b2_ref[...]
    h2 = jnp.maximum(h2, 0.0).astype(jnp.bfloat16)

    # Fused [policy | value | zero-pad] head: one MXU push, one lane-dense
    # 128-wide f32 store.
    out_ref[...] = (
        jnp.dot(h2, wh_ref[...], preferred_element_type=jnp.float32) + bh_ref[...]
    )


def _round_up(x, m):
    return ((x + m - 1) // m) * m


def simple_mlp_forward(obs_nchw, kernel_params, num_outputs, *, max_tile_b=2048):
    """obs_nchw: (B, C, H, W) uint8 (or any numeric dtype).

    Returns (policy_logits, value). value has shape (B, 1); the torch module's
    value_function() is just value.flatten() on the host side.
    """
    B = obs_nchw.shape[0]
    x = obs_nchw.reshape(B, -1)            # Flatten(start_dim=1); native dtype
    d_obs = x.shape[1]

    w1s, b1, w2, b2, wh, bh = kernel_params
    head_pad = wh.shape[1]

    # ---- batch tile selection --------------------------------------------
    # Want >= 4 grid steps whenever possible (input DMA pipelining + both v7x
    # TensorCores via the "parallel" batch axis).  tile_b is a multiple of 32
    # (uint8 sublane packing) and capped by a VMEM budget safe on v7x (64 MiB
    # per TC) — the budget also scales tile_b down for large d_obs.
    x_itemsize = x.dtype.itemsize
    per_row_bytes = (
        d_obs * (2 * x_itemsize + 6)   # double-buffered x stream + f32/bf16 cast
        + 128 * 12                     # h1, h2 intermediates (f32 + bf16)
        + head_pad * 8                 # double-buffered f32 output
    )
    weight_bytes = (
        (int(w1s.size) + int(w2.size) + int(wh.size)) * 2
        + (int(b1.size) + int(b2.size) + int(bh.size)) * 4
    )
    vmem_budget = 40 * 1024 * 1024     # headroom under v7x's 64 MiB per-TC VMEM
    rows_cap = max(32, ((vmem_budget - weight_bytes) // per_row_bytes) // 32 * 32)

    if B < 128:
        tile_b = B                     # tiny batch: one full-array block
    else:
        tile_b = max(32, _round_up(pl.cdiv(B, 4), 32))          # >= 4 steps
        tile_b = min(tile_b, max(32, (max_tile_b // 32) * 32), rows_cap)
    grid = (pl.cdiv(B, tile_b),)

    footprint = weight_bytes + per_row_bytes * tile_b
    vmem_limit = int(min(48 * 1024 * 1024,
                         max(16 * 1024 * 1024, footprint + (4 << 20))))

    def const_spec(shape):
        # Grid-invariant operand: constant index_map, single-buffered so it
        # does not pay double VMEM (matters when d_obs / w1 is large).
        zeros = (0,) * len(shape)

        def idx(i):
            return zeros

        return pl.BlockSpec(shape, idx, pipeline_mode=pl.Buffered(1))

    flops = 2 * B * (d_obs * 128 + 128 * H2_PAD + H2_PAD * head_pad)
    bytes_accessed = B * d_obs * x_itemsize + B * head_pad * 4 + weight_bytes

    out_full = pl.pallas_call(
        _mlp_kernel,
        grid=grid,
        in_specs=[
            pl.BlockSpec((tile_b, d_obs), lambda i: (i, 0)),     # streamed x
            const_spec(w1s.shape), const_spec(b1.shape),          # VMEM-resident
            const_spec(w2.shape), const_spec(b2.shape),
            const_spec(wh.shape), const_spec(bh.shape),
        ],
        out_specs=pl.BlockSpec((tile_b, head_pad), lambda i: (i, 0)),
        out_shape=jax.ShapeDtypeStruct((B, head_pad), jnp.float32),
        compiler_params=pltpu.CompilerParams(
            dimension_semantics=("parallel",),   # v7x: shard batch over both TCs
            vmem_limit_bytes=vmem_limit,
        ),
        cost_estimate=pl.CostEstimate(
            flops=flops, transcendentals=0, bytes_accessed=bytes_accessed),
    )(x, w1s, b1, w2, b2, wh, bh)

    policy = out_full[:, :num_outputs]
    value = out_full[:, num_outputs:num_outputs + 1]
    return policy, value


def init_params(key, d_obs, num_outputs):
    """PyTorch nn.Linear-style uniform(-1/sqrt(fan_in), 1/sqrt(fan_in)) init.

    Weights stored as (in, out) — the transpose of nn.Linear.weight.
    Returns the canonical f32 params (unscaled, unfused, unpadded).
    """
    def linear(key, fan_in, fan_out):
        kw, kb = jax.random.split(key)
        bound = 1.0 / jnp.sqrt(jnp.float32(fan_in))
        w = jax.random.uniform(kw, (fan_in, fan_out), jnp.float32, -bound, bound)
        b = jax.random.uniform(kb, (1, fan_out), jnp.float32, -bound, bound)
        return w, b

    k1, k2, k3, k4 = jax.random.split(key, 4)
    w1, b1 = linear(k1, d_obs, 128)
    w2, b2 = linear(k2, 128, 32)
    wp, bp = linear(k3, 32, num_outputs)
    wv, bv = linear(k4, 32, 1)
    return w1, b1, w2, b2, wp, bp, wv, bv


def prepare_kernel_params(params):
    """One-time prep outside the hot path:
      * fold 1/255 into w1,
      * zero-pad layer-2 to 128 output columns (lane-dense h2),
      * fuse policy/value heads into one 128-lane-padded weight/bias,
      * cast weights to bf16 (biases stay f32, added to f32 accumulators)."""
    w1, b1, w2, b2, wp, bp, wv, bv = params
    num_outputs = wp.shape[1]
    head_width = num_outputs + 1
    head_pad = 128 * pl.cdiv(head_width, 128)
    h2_w = w2.shape[1]  # 32

    w1s = (w1 * jnp.float32(1.0 / 255.0)).astype(jnp.bfloat16)
    b1f = b1.astype(jnp.float32)

    w2p = jnp.zeros((w2.shape[0], H2_PAD), jnp.float32).at[:, :h2_w].set(w2)
    b2p = jnp.zeros((1, H2_PAD), jnp.float32).at[:, :h2_w].set(b2)

    wh = jnp.zeros((H2_PAD, head_pad), jnp.float32)
    wh = wh.at[:h2_w, :num_outputs].set(wp)
    wh = wh.at[:h2_w, num_outputs:head_width].set(wv)
    bh = jnp.zeros((1, head_pad), jnp.float32)
    bh = bh.at[:, :num_outputs].set(bp)
    bh = bh.at[:, num_outputs:head_width].set(bv)

    return (w1s, b1f, w2p.astype(jnp.bfloat16), b2p, wh.astype(jnp.bfloat16), bh)


def reference_forward(obs_nchw, params):
    """Pure-JAX f32 reference matching the torch module exactly."""
    w1, b1, w2, b2, wp, bp, wv, bv = params
    x = obs_nchw.astype(jnp.float32).reshape(obs_nchw.shape[0], -1) / 255.0
    h1 = jnp.maximum(x @ w1 + b1, 0.0)
    h2 = jnp.maximum(h1 @ w2 + b2, 0.0)
    return h2 @ wp + bp, h2 @ wv + bv


def reference_forward_bf16(obs_nchw, kernel_params, num_outputs):
    """Pure-JAX replica of the exact bf16 computation the kernel performs."""
    w1s, b1, w2, b2, wh, bh = kernel_params
    x = obs_nchw.reshape(obs_nchw.shape[0], -1).astype(jnp.float32).astype(jnp.bfloat16)
    h1 = jnp.dot(x, w1s, preferred_element_type=jnp.float32) + b1
    h1 = jnp.maximum(h1, 0.0).astype(jnp.bfloat16)
    h2 = jnp.dot(h1, w2, preferred_element_type=jnp.float32) + b2
    h2 = jnp.maximum(h2, 0.0).astype(jnp.bfloat16)
    out = jnp.dot(h2, wh, preferred_element_type=jnp.float32) + bh
    return out[:, :num_outputs], out[:, num_outputs:num_outputs + 1]


if __name__ == "__main__":
    # Small shapes consistent with an image-like obs space: (B, C, H, W)
    B, C, H, W = 2, 4, 16, 16
    num_outputs = 8
    d_obs = C * H * W  # 1024 flattened observation dim

    key = jax.random.PRNGKey(0)
    k_obs, k_obs2, k_params = jax.random.split(key, 3)

    # Pixel observations stay uint8 end-to-end (cast happens inside the kernel).
    obs = jax.random.randint(k_obs, (B, C, H, W), 0, 256, dtype=jnp.int32)
    obs = obs.astype(jnp.uint8)

    params = init_params(k_params, d_obs, num_outputs)
    kparams = prepare_kernel_params(params)

    # --- test 1: tiny batch (single full-array block, grid=(1,)) -------------
    policy, value = simple_mlp_forward(obs, kparams, num_outputs)
    jax.block_until_ready((policy, value))
    assert policy.shape == (B, num_outputs) and value.shape == (B, 1)

    # Tight check vs. an exact replica of the bf16 computation, loose check vs.
    # the f32 torch-semantics reference (bf16 weights => ~1e-3 relative error).
    bpol, bval = reference_forward_bf16(obs, kparams, num_outputs)
    fpol, fval = reference_forward(obs, params)
    assert jnp.allclose(policy, bpol, atol=5e-3, rtol=5e-3)
    assert jnp.allclose(value, bval, atol=5e-3, rtol=5e-3)
    assert jnp.allclose(policy, fpol, atol=2e-2, rtol=2e-2)
    assert jnp.allclose(value, fval, atol=2e-2, rtol=2e-2)

    # --- test 2: batch-tiled, pipelined path (grid=(4,), both v7x TCs) -------
    B2 = 512
    obs2 = jax.random.randint(k_obs2, (B2, C, H, W), 0, 256, dtype=jnp.int32)
    obs2 = obs2.astype(jnp.uint8)
    policy2, value2 = simple_mlp_forward(obs2, kparams, num_outputs)
    jax.block_until_ready((policy2, value2))
    assert policy2.shape == (B2, num_outputs) and value2.shape == (B2, 1)

    bpol2, bval2 = reference_forward_bf16(obs2, kparams, num_outputs)
    fpol2, fval2 = reference_forward(obs2, params)
    assert jnp.allclose(policy2, bpol2, atol=5e-3, rtol=5e-3)
    assert jnp.allclose(value2, bval2, atol=5e-3, rtol=5e-3)
    assert jnp.allclose(policy2, fpol2, atol=2e-2, rtol=2e-2)
    assert jnp.allclose(value2, fval2, atol=2e-2, rtol=2e-2)

    # value_function() in the torch module returns value.flatten() — host glue:
    _ = value2.reshape(-1)

    print("KERNEL_OK")
</pallas_src>

<mosaic_0001>
module attributes {stable_mosaic.version = 11 : i64} {
  func.func @_mlp_kernel(%arg0: i32, %arg1: memref<2x1024xi8, #tpu.memory_space<vmem>>, %arg2: memref<1024x128xbf16, #tpu.memory_space<vmem>>, %arg3: memref<1x128xf32, #tpu.memory_space<vmem>>, %arg4: memref<128x128xbf16, #tpu.memory_space<vmem>>, %arg5: memref<1x128xf32, #tpu.memory_space<vmem>>, %arg6: memref<128x128xbf16, #tpu.memory_space<vmem>>, %arg7: memref<1x128xf32, #tpu.memory_space<vmem>>, %arg8: memref<2x128xf32, #tpu.memory_space<vmem>>) attributes {dimension_semantics = [#tpu.dimension_semantics<parallel>], iteration_bounds = array<i64: 1>, scalar_prefetch = 0 : i64, scratch_operands = 0 : i64, tpu.core_type = #tpu.core_type<tc>, window_params = [{transform_indices = @transform_0, window_bounds = array<i64: 2, 1024>}, {pipeline_mode = #tpu.pipeline_mode<synchronous>, transform_indices = @transform_1, window_bounds = array<i64: 1024, 128>}, {pipeline_mode = #tpu.pipeline_mode<synchronous>, transform_indices = @transform_2, window_bounds = array<i64: 1, 128>}, {pipeline_mode = #tpu.pipeline_mode<synchronous>, transform_indices = @transform_3, window_bounds = array<i64: 128, 128>}, {pipeline_mode = #tpu.pipeline_mode<synchronous>, transform_indices = @transform_4, window_bounds = array<i64: 1, 128>}, {pipeline_mode = #tpu.pipeline_mode<synchronous>, transform_indices = @transform_5, window_bounds = array<i64: 128, 128>}, {pipeline_mode = #tpu.pipeline_mode<synchronous>, transform_indices = @transform_6, window_bounds = array<i64: 1, 128>}, {transform_indices = @transform_7, window_bounds = array<i64: 2, 128>}]} {
    %c0 = arith.constant 0 : index
    %c0_0 = arith.constant 0 : index
    %0 = vector.load %arg1[%c0, %c0_0] : memref<2x1024xi8, #tpu.memory_space<vmem>>, vector<2x1024xi8>
    %1 = arith.uitofp %0 : vector<2x1024xi8> to vector<2x1024xf32>
    %2 = arith.truncf %1 : vector<2x1024xf32> to vector<2x1024xbf16>
    %c0_1 = arith.constant 0 : index
    %c0_2 = arith.constant 0 : index
    %3 = vector.load %arg2[%c0_1, %c0_2] : memref<1024x128xbf16, #tpu.memory_space<vmem>>, vector<1024x128xbf16>
    %cst = arith.constant dense<0.000000e+00> : vector<2x128xf32>
    %4 = tpu.matmul %2, %3, %cst {dimension_numbers = #tpu.dot_dimension_numbers<[1], [0], [0], [1], [0, 0, 1, 1], [], []>} : vector<2x1024xbf16>, vector<1024x128xbf16>, vector<2x128xf32> -> vector<2x128xf32>
    %c0_3 = arith.constant 0 : index
    %c0_4 = arith.constant 0 : index
    %5 = vector.load %arg3[%c0_3, %c0_4] : memref<1x128xf32, #tpu.memory_space<vmem>>, vector<1x128xf32>
    %6 = vector.broadcast %5 : vector<1x128xf32> to vector<2x128xf32>
    %7 = arith.addf %4, %6 : vector<2x128xf32>
    %cst_5 = arith.constant 0.000000e+00 : f32
    %8 = vector.broadcast %cst_5 : f32 to vector<2x128xf32>
    %9 = arith.maximumf %7, %8 : vector<2x128xf32>
    %10 = arith.truncf %9 : vector<2x128xf32> to vector<2x128xbf16>
    %c0_6 = arith.constant 0 : index
    %c0_7 = arith.constant 0 : index
    %11 = vector.load %arg4[%c0_6, %c0_7] : memref<128x128xbf16, #tpu.memory_space<vmem>>, vector<128x128xbf16>
    %cst_8 = arith.constant dense<0.000000e+00> : vector<2x128xf32>
    %12 = tpu.matmul %10, %11, %cst_8 {dimension_numbers = #tpu.dot_dimension_numbers<[1], [0], [0], [1], [0, 0, 1, 1], [], []>} : vector<2x128xbf16>, vector<128x128xbf16>, vector<2x128xf32> -> vector<2x128xf32>
    %c0_9 = arith.constant 0 : index
    %c0_10 = arith.constant 0 : index
    %13 = vector.load %arg5[%c0_9, %c0_10] : memref<1x128xf32, #tpu.memory_space<vmem>>, vector<1x128xf32>
    %14 = vector.broadcast %13 : vector<1x128xf32> to vector<2x128xf32>
    %15 = arith.addf %12, %14 : vector<2x128xf32>
    %cst_11 = arith.constant 0.000000e+00 : f32
    %16 = vector.broadcast %cst_11 : f32 to vector<2x128xf32>
    %17 = arith.maximumf %15, %16 : vector<2x128xf32>
    %18 = arith.truncf %17 : vector<2x128xf32> to vector<2x128xbf16>
    %c0_12 = arith.constant 0 : index
    %c0_13 = arith.constant 0 : index
    %19 = vector.load %arg6[%c0_12, %c0_13] : memref<128x128xbf16, #tpu.memory_space<vmem>>, vector<128x128xbf16>
    %cst_14 = arith.constant dense<0.000000e+00> : vector<2x128xf32>
    %20 = tpu.matmul %18, %19, %cst_14 {dimension_numbers = #tpu.dot_dimension_numbers<[1], [0], [0], [1], [0, 0, 1, 1], [], []>} : vector<2x128xbf16>, vector<128x128xbf16>, vector<2x128xf32> -> vector<2x128xf32>
    %c0_15 = arith.constant 0 : index
    %c0_16 = arith.constant 0 : index
    %21 = vector.load %arg7[%c0_15, %c0_16] : memref<1x128xf32, #tpu.memory_space<vmem>>, vector<1x128xf32>
    %22 = vector.broadcast %21 : vector<1x128xf32> to vector<2x128xf32>
    %23 = arith.addf %20, %22 : vector<2x128xf32>
    %c0_17 = arith.constant 0 : index
    %c0_18 = arith.constant 0 : index
    %24 = vector.load %arg8[%c0_17, %c0_18] : memref<2x128xf32, #tpu.memory_space<vmem>>, vector<2x128xf32>
    tpu.vector_store %arg8[%c0_17, %c0_18], %23 {strides = array<i32>} : memref<2x128xf32, #tpu.memory_space<vmem>>, vector<2x128xf32>,
    return
  }
  func.func @transform_0(%arg0: i32) -> (i32, i32) {
    %c0_i32 = arith.constant 0 : i32
    %c0_i32_0 = arith.constant 0 : i32
    return %arg0, %c0_i32 : i32, i32
  }
  func.func @transform_1(%arg0: i32) -> (i32, i32) {
    %c0_i32 = arith.constant 0 : i32
    %c0_i32_0 = arith.constant 0 : i32
    %c0_i32_1 = arith.constant 0 : i32
    return %c0_i32, %c0_i32_0 : i32, i32
  }
  func.func @transform_2(%arg0: i32) -> (i32, i32) {
    %c0_i32 = arith.constant 0 : i32
    %c0_i32_0 = arith.constant 0 : i32
    %c0_i32_1 = arith.constant 0 : i32
    return %c0_i32, %c0_i32_0 : i32, i32
  }
  func.func @transform_3(%arg0: i32) -> (i32, i32) {
    %c0_i32 = arith.constant 0 : i32
    %c0_i32_0 = arith.constant 0 : i32
    %c0_i32_1 = arith.constant 0 : i32
    return %c0_i32, %c0_i32_0 : i32, i32
  }
  func.func @transform_4(%arg0: i32) -> (i32, i32) {
    %c0_i32 = arith.constant 0 : i32
    %c0_i32_0 = arith.constant 0 : i32
    %c0_i32_1 = arith.constant 0 : i32
    return %c0_i32, %c0_i32_0 : i32, i32
  }
  func.func @transform_5(%arg0: i32) -> (i32, i32) {
    %c0_i32 = arith.constant 0 : i32
    %c0_i32_0 = arith.constant 0 : i32
    %c0_i32_1 = arith.constant 0 : i32
    return %c0_i32, %c0_i32_0 : i32, i32
  }
  func.func @transform_6(%arg0: i32) -> (i32, i32) {
    %c0_i32 = arith.constant 0 : i32
    %c0_i32_0 = arith.constant 0 : i32
    %c0_i32_1 = arith.constant 0 : i32
    return %c0_i32, %c0_i32_0 : i32, i32
  }
  func.func @transform_7(%arg0: i32) -> (i32, i32) {
    %c0_i32 = arith.constant 0 : i32
    %c0_i32_0 = arith.constant 0 : i32
    return %arg0, %c0_i32 : i32, i32
  }
}

</mosaic_0001>

<bundles_post_ra>
// kernel: tpu_custom_call.1
= control target key start
LH: loop header
LB: loop body
LE: loop exit
PB: predicated region body
PF: predicated region fallthrough
CT: control target
= control target key end

     0   :  { %12 = vsyncpa [#allocation3], 0  ;;  %s1656_s0 = inlined_call_operand.hbm [shape: u8[2,1024], index: 0, kind: input, shape index: {}]   ;;  %s1657_s1 = inlined_call_operand.hbm [shape: bf16[1024,128], index: 1, kind: input, shape index: {}]   ;;  %s1658_s2 = inlined_call_operand.vmem [shape: f32[1,128], index: 2, kind: input, shape index: {}]   ;;  %s1659_s3 = inlined_call_operand.hbm [shape: bf16[128,128], index: 3, kind: input, shape index: {}]   ;;  %s1660_s4 = inlined_call_operand.vmem [shape: f32[1,128], index: 4, kind: input, shape index: {}]   ;;  %s1661_s5 = inlined_call_operand.hbm [shape: bf16[128,128], index: 5, kind: input, shape index: {}]   ;;  %s1662_s6 = inlined_call_operand.vmem [shape: f32[1,128], index: 6, kind: input, shape index: {}]   ;;  %s1663_s7 = inlined_call_operand.hbm [shape: f32[2,128], index: 7, kind: output, shape index: {}]  }
   0x1   :  { %13 = vsyncpa [#allocation6], 0 }
   0x2   :  { %14 = vsyncpa [#allocation9], 0 }
   0x3   :  { %15 = vsyncpa [#allocation4], 0  ;;  %s1498_s24 = smov [#allocation5]   ;;  %s1380_s28 = scalar_lea.hbm %s1657_s1, 8192 }
   0x4   :  { %s31_s25 = sshll.u32 %s1498_s24, 4  ;;  %p1381_p0 = scmp.ne.s32.totalorder %s1657_s1, %s1380_s28  ;;  %s32_s25 = int_to_ptr.vmem [resolvable:$true] %s31_s25 }
   0x5   :  { %p1384_p1 = scmp.lt.u32.totalorder %s1380_s28, %s1657_s1 }
   0x7   :  { %p1386_p2 = pnand %p1384_p1, %p1381_p0 }
   0x9   :  { %1389 = shalt.err (!%p1386_p2)
}
   0xa   :  { %s1390_s10 = scalar_lea.vmem %s32_s25, 8192  ;;  %p1395_p4 = scmp.lt.s32.totalorder %s32_s25, %s32_s25 }
   0xb   :  { %p1391_p3 = scmp.ne.s32.totalorder %s32_s25, %s1390_s10  ;;  %p1396_p5 = scmp.lt.s32.totalorder %s1390_s10, %s1390_s10 }
   0xd   :  { %p1397_p6 = por %p1396_p5, %p1395_p4 }
   0xf   :  { %p1398_p7 = pnand %p1397_p6, %p1391_p3 }
  0x11   :  { %1401 = shalt.err (!%p1398_p7)
}
  0x12   :  { %s1499_s11 = smov 64   ;;  %s1500_s12 = smov 4  }
  0x13   :  { %37 = dma.hbm_to_vmem [thread:$0]  %s1657_s1, 8192, %s32_s25, [#allocation6], %s1499_s11, %s1499_s11, %s1500_s12  }
  0x14   :  { %s1501_s15 = smov [#allocation2]   ;;  %s1502_s17 = smov [#allocation7]  }
  0x15   :  { %s22_s16 = sshll.u32 %s1501_s15, 4  ;;  %s45_s18 = sshll.u32 %s1502_s17, 4  ;;  %s23_s16 = int_to_ptr.vmem [resolvable:$true] %s22_s16  ;;  %s46_s18 = int_to_ptr.vmem [resolvable:$true] %s45_s18 }
  0x16   :  { %s1402_s21 = scalar_lea.hbm %s1656_s0, 128 }
  0x17   :  { %p1403_p8 = scmp.ne.s32.totalorder %s1656_s0, %s1402_s21  ;;  %p1406_p9 = scmp.lt.u32.totalorder %s1402_s21, %s1656_s0 }
  0x19   :  { %p1408_p10 = pnand %p1406_p9, %p1403_p8 }
  0x1b   :  { %1411 = shalt.err (!%p1408_p10)
}
  0x1c   :  { %s1412_s1 = scalar_lea.vmem %s23_s16, 128  ;;  %p1417_p12 = scmp.lt.s32.totalorder %s23_s16, %s23_s16 }
  0x1d   :  { %p1413_p11 = scmp.ne.s32.totalorder %s23_s16, %s1412_s1  ;;  %p1418_p13 = scmp.lt.s32.totalorder %s1412_s1, %s1412_s1 }
  0x1f   :  { %p1419_p0 = por %p1418_p13, %p1417_p12 }
  0x21   :  { %p1420_p1 = pnand %p1419_p0, %p1413_p11 }
  0x23   :  { %1423 = shalt.err (!%p1420_p1)
}
  0x24   :  { %25 = dma.hbm_to_vmem [thread:$0]  %s1656_s0, 128, %s23_s16, [#allocation3]  }
  0x25   :  { %s1424_s30 = scalar_lea.hbm %s1659_s3, 1024 }
  0x26   :  { %p1425_p2 = scmp.ne.s32.totalorder %s1659_s3, %s1424_s30  ;;  %p1428_p3 = scmp.lt.u32.totalorder %s1424_s30, %s1659_s3 }
  0x28   :  { %p1430_p4 = pnand %p1428_p3, %p1425_p2 }
  0x2a   :  { %1433 = shalt.err (!%p1430_p4)
}
  0x2b   :  { %s1434_s14 = scalar_lea.vmem %s46_s18, 1024  ;;  %p1439_p6 = scmp.lt.s32.totalorder %s46_s18, %s46_s18 }
  0x2c   :  { %p1435_p5 = scmp.ne.s32.totalorder %s46_s18, %s1434_s14  ;;  %p1440_p7 = scmp.lt.s32.totalorder %s1434_s14, %s1434_s14 }
  0x2e   :  { %p1441_p8 = por %p1440_p7, %p1439_p6 }
  0x30   :  { %p1442_p9 = pnand %p1441_p8, %p1435_p5 }
  0x32   :  { %1445 = shalt.err (!%p1442_p9)
}
  0x33   :  { %51 = dma.hbm_to_vmem [thread:$0]  %s1659_s3, 1024, %s46_s18, [#allocation6], %s1499_s11, %s1499_s11, %s1500_s12  }
  0x34   :  { %s1503_s16 = smov [#allocation8]   ;;  %s1446_s21 = scalar_lea.hbm %s1661_s5, 1024 }
  0x35   :  { %s59_s17 = sshll.u32 %s1503_s16, 4  ;;  %p1447_p10 = scmp.ne.s32.totalorder %s1661_s5, %s1446_s21  ;;  %s60_s17 = int_to_ptr.vmem [resolvable:$true] %s59_s17 }
  0x36   :  { %p1450_p11 = scmp.lt.u32.totalorder %s1446_s21, %s1661_s5 }
  0x38   :  { %p1452_p12 = pnand %p1450_p11, %p1447_p10 }
  0x3a   :  { %1455 = shalt.err (!%p1452_p12)
}
  0x3b   :  { %s1456_s1 = scalar_lea.vmem %s60_s17, 1024  ;;  %p1461_p0 = scmp.lt.s32.totalorder %s60_s17, %s60_s17 }
  0x3c   :  { %p1457_p13 = scmp.ne.s32.totalorder %s60_s17, %s1456_s1  ;;  %p1462_p1 = scmp.lt.s32.totalorder %s1456_s1, %s1456_s1 }
  0x3e   :  { %p1463_p2 = por %p1462_p1, %p1461_p0 }
  0x40   :  { %p1464_p3 = pnand %p1463_p2, %p1457_p13 }
  0x42   :  { %1467 = shalt.err (!%p1464_p3)
}
  0x43   :  { %65 = dma.hbm_to_vmem [thread:$0]  %s1661_s5, 1024, %s60_s17, [#allocation9], %s1499_s11, %s1499_s11, %s1500_s12  }
  0x44   :  { %1490 = dma.done.wait [#allocation3], 128  }
  0x45   :  { %1491 = vsyncadd [#allocation3], 4294967168 }
  0x46   :  { %1492 = dma.done.wait [#allocation6], 9216  }
  0x47   :  { %1493 = vsyncadd [#allocation6], 4294958080 }
  0x48   :  { %1494 = dma.done.wait [#allocation9], 1024  }
  0x49   :  { %1495 = vsyncadd [#allocation9], 4294966272  ;;  %v1299_v0 = vld [vmem:[#allocation5 + $0x40] sm:$0xff]   ;;  %v1303_v4 = vld [vmem:[#allocation5 + $0x48] sm:$0xff]   ;;  %v1504_v22 = vmov 1935823168   ;;  %v86_v24 = vlaneseq }
  0x4a   :  { %v1300_v1 = vld [vmem:[#allocation5 + $0xc0] sm:$0xff]   ;;  %1143 = vmatprep.subr.bf16.mxu0 %v1299_v0  ;;  %v1304_v5 = vld [vmem:[#allocation5 + $0xc8] sm:$0xff]   ;;  %v1307_v8 = vld [vmem:[#allocation5 + $0x50] sm:$0xff]   ;;  %v84_v23 = vunpack.c.l.s4 %v1504_v22  ;;  %vm1506_vm0 = vmmov 0   ;;  %s1507_s28 = smov [#allocation10]  }
  0x4b   :  { %v1301_v2 = vld [vmem:[#allocation5] sm:$0xff]   ;;  %1165 = vmatprep.subr.bf16.mxu1 %v1300_v1  ;;  %v1305_v6 = vld [vmem:[#allocation5 + $0x8] sm:$0xff]   ;;  %v1308_v9 = vld [vmem:[#allocation5 + $0xd0] sm:$0xff]   ;;  %v87_v30 = vshrl.u32 %v86_v24, 7  ;;  %s1041_s29 = sshll.u32 %s1507_s28, 4  ;;  %s1042_s29 = int_to_ptr.vmem [resolvable:$true] %s1041_s29 }
  0x4c   :  { %v1302_v3 = vld [vmem:[#allocation5 + $0x80] sm:$0xff]   ;;  %1144 = vmatpush3.bf16.msra.mxu0 %v1301_v2  ;;  %v1306_v7 = vld [vmem:[#allocation5 + $0x88] sm:$0xff]   ;;  %v1309_v10 = vld [vmem:[#allocation5 + $0x10] sm:$0xff]   ;;  %v85_v29 = vunpack.c.0.s8 %v84_v23  ;;  %v1505_v23 = vmov 0.0   ;;  %p1473_p5 = scmp.lt.s32.totalorder %s1042_s29, %s1042_s29 }
  0x4d   :  { %1166 = vmatpush3.bf16.msra.mxu1 %v1302_v3  ;;  %1145 = vmatprep.subr.bf16.mxu0 %v1303_v4  ;;  %v1310_v11 = vld [vmem:[#allocation5 + $0x90] sm:$0xff]   ;;  %v1311_v12 = vld [vmem:[#allocation5 + $0x58] sm:$0xff]   ;;  %v1315_v16 = vld [vmem:[#allocation5 + $0x60] sm:$0xff]  }
  0x4e   :  { %1167 = vmatprep.subr.bf16.mxu1 %v1304_v5  ;;  %v1312_v13 = vld [vmem:[#allocation5 + $0xd8] sm:$0xff]   ;;  %v1316_v17 = vld [vmem:[#allocation5 + $0xe0] sm:$0xff]   ;;  %v1319_v20 = vld [vmem:[#allocation5 + $0x68] sm:$0xff]   ;;  %v88_v35 = vsub.s32 %v85_v29, %v87_v30 }
  0x4f   :  { %v1313_v14 = vld [vmem:[#allocation5 + $0x18] sm:$0xff]   ;;  %v1317_v18 = vld [vmem:[#allocation5 + $0x20] sm:$0xff]   ;;  %v1320_v21 = vld [vmem:[#allocation5 + $0xe8] sm:$0xff]  }
  0x50   :  { %1146 = vmatpush3.bf16.msra.mxu0 %v1305_v6  ;;  %v1314_v15 = vld [vmem:[#allocation5 + $0x98] sm:$0xff]   ;;  %v1318_v19 = vld [vmem:[#allocation5 + $0xa0] sm:$0xff]   ;;  %v1321_v25 = vld [vmem:[#allocation5 + $0x28] sm:$0xff]  }
  0x51   :  { %1168 = vmatpush3.bf16.msra.mxu1 %v1306_v7  ;;  %1147 = vmatprep.subr.bf16.mxu0 %v1307_v8  ;;  %v1322_v26 = vld [vmem:[#allocation5 + $0xa8] sm:$0xff]   ;;  %v1323_v27 = vld [vmem:[#allocation5 + $0x70] sm:$0xff]   ;;  %v1327_v33 = vld [vmem:[#allocation5 + $0x78] sm:$0xff]  }
  0x52   :  { %1169 = vmatprep.subr.bf16.mxu1 %v1308_v9  ;;  %v1324_v28 = vld [vmem:[#allocation5 + $0xf0] sm:$0xff]   ;;  %v1328_v34 = vld [vmem:[#allocation5 + $0xf8] sm:$0xff]   ;;  %v1332_v41 = vld [vmem:[#allocation5 + $0x140] sm:$0xff]  }
  0x53   :  { %v1325_v31 = vld [vmem:[#allocation5 + $0x30] sm:$0xff]   ;;  %v1329_v36 = vld [vmem:[#allocation5 + $0x38] sm:$0xff]   ;;  %v1333_v42 = vld [vmem:[#allocation5 + $0x1c0] sm:$0xff]  }
  0x54   :  { %1148 = vmatpush3.bf16.msra.mxu0 %v1309_v10  ;;  %v1326_v32 = vld [vmem:[#allocation5 + $0xb0] sm:$0xff]   ;;  %v1330_v37 = vld [vmem:[#allocation5 + $0xb8] sm:$0xff]   ;;  %v1334_v45 = vld [vmem:[#allocation5 + $0x100] sm:$0xff]  }
  0x55   :  { %1170 = vmatpush3.bf16.msra.mxu1 %v1310_v11  ;;  %1149 = vmatprep.subr.bf16.mxu0 %v1311_v12  ;;  %v81_v38 = vld [vmem:[#allocation2] sm:$0xff]  ;;  %v1335_v47 = vld [vmem:[#allocation5 + $0x180] sm:$0xff]   ;;  %v1336_v52 = vld [vmem:[#allocation5 + $0x148] sm:$0xff]  }
  0x56   :  { %1171 = vmatprep.subr.bf16.mxu1 %v1312_v13  ;;  %v82_v39 = vcombine.high %v81_v38, %v81_v38  ;;  %v89_v40 = vrot.slane %v81_v38, %v88_v35  ;;  %v1337_v53 = vld [vmem:[#allocation5 + $0x1c8] sm:$0xff]   ;;  %v1340_v60 = vld [vmem:[#allocation5 + $0x150] sm:$0xff]   ;;  %v1344_v0 = vld [vmem:[#allocation5 + $0x158] sm:$0xff]  }
  0x57   :  { %v1338_v56 = vld [vmem:[#allocation5 + $0x108] sm:$0xff]   ;;  %v1341_v61 = vld [vmem:[#allocation5 + $0x1d0] sm:$0xff]   ;;  %v1345_v1 = vld [vmem:[#allocation5 + $0x1d8] sm:$0xff]  }
  0x58   :  { %1150 = vmatpush3.bf16.msra.mxu0 %v1313_v14  ;;  %v97_v43 = vunpack.c.l.u8.bf16 %v89_v40  ;;  %v98_v44 = vunpack.c.h.u8.bf16 %v89_v40  ;;  %v96_v46 = vrot.slane %v82_v39, %v88_v35  ;;  %v1339_v57 = vld [vmem:[#allocation5 + $0x188] sm:$0xff]   ;;  %v1342_v62 = vld [vmem:[#allocation5 + $0x110] sm:$0xff]   ;;  %v1346_v2 = vld [vmem:[#allocation5 + $0x118] sm:$0xff]  }
  0x59   :  { %1172 = vmatpush3.bf16.msra.mxu1 %v1314_v15  ;;  %1151 = vmatprep.subr.bf16.mxu0 %v1315_v16  ;;  %v1343_v63 = vld [vmem:[#allocation5 + $0x190] sm:$0xff]   ;;  %v1347_v3 = vld [vmem:[#allocation5 + $0x198] sm:$0xff]   ;;  %v1348_v4 = vld [vmem:[#allocation5 + $0x160] sm:$0xff]  }
  0x5a   :  { %1173 = vmatprep.subr.bf16.mxu1 %v1316_v17  ;;  %v1054_v48 = vcombine.high %v97_v43, %v97_v43  ;;  %v1056_v49 = vcombine.high %v98_v44, %v98_v44  ;;  %v1053_v50 = vcombine.low %v97_v43, %v97_v43  ;;  %v1055_v51 = vcombine.low %v98_v44, %v98_v44  ;;  %v1349_v5 = vld [vmem:[#allocation5 + $0x1e0] sm:$0xff]   ;;  %v1352_v8 = vld [vmem:[#allocation5 + $0x168] sm:$0xff]   ;;  %v1356_v12 = vld [vmem:[#allocation5 + $0x170] sm:$0xff]  }
  0x5b   :  { %v1605_v54 = vunpack.c.l.u8.bf16 %v96_v46  ;;  %v1607_v55 = vunpack.c.h.u8.bf16 %v96_v46  ;;  %v1350_v6 = vld [vmem:[#allocation5 + $0x120] sm:$0xff]   ;;  %v1353_v9 = vld [vmem:[#allocation5 + $0x1e8] sm:$0xff]   ;;  %v1357_v13 = vld [vmem:[#allocation5 + $0x1f0] sm:$0xff]  }
  0x5c   :  { %1152 = vmatpush3.bf16.msra.mxu0 %v1317_v18  ;;  %680 = vmatprep.mubr.bf16.mxu0 %v1054_v48  ;;  %v1351_v7 = vld [vmem:[#allocation5 + $0x1a0] sm:$0xff]   ;;  %v1354_v10 = vld [vmem:[#allocation5 + $0x128] sm:$0xff]   ;;  %v1358_v14 = vld [vmem:[#allocation5 + $0x130] sm:$0xff]  }
  0x5d   :  { %1174 = vmatpush3.bf16.msra.mxu1 %v1318_v19  ;;  %1153 = vmatprep.subr.bf16.mxu0 %v1319_v20  ;;  %v1058_v58 = vcombine.high %v1605_v54, %v1605_v54  ;;  %v1060_v59 = vcombine.high %v1607_v55, %v1607_v55  ;;  %v1355_v11 = vld [vmem:[#allocation5 + $0x1a8] sm:$0xff]   ;;  %v1359_v15 = vld [vmem:[#allocation5 + $0x1b0] sm:$0xff]   ;;  %v1360_v16 = vld [vmem:[#allocation5 + $0x178] sm:$0xff]   ;;  %v1057_v20 = vcombine.low %v1605_v54, %v1605_v54 }
  0x5e   :  { %1175 = vmatprep.subr.bf16.mxu1 %v1320_v21  ;;  %720 = vmatprep.mubr.bf16.mxu1 %v1056_v49  ;;  %v1361_v17 = vld [vmem:[#allocation5 + $0x1f8] sm:$0xff]   ;;  %v1059_v21 = vcombine.low %v1607_v55, %v1607_v55  ;;  %v1364_v22 = vld [vmem:[#allocation7] sm:$0xff]   ;;  %v1365_v24 = vld [vmem:[#allocation7 + $0x8] sm:$0xff]  }
  0x5f   :  { %v1362_v18 = vld [vmem:[#allocation5 + $0x138] sm:$0xff]   ;;  %v1370_v29 = vld [vmem:[#allocation7 + $0x30] sm:$0xff]   ;;  %v1376_v35 = vld [vmem:[#allocation8 + $0x20] sm:$0xff]  }
  0x60   :  { %1154 = vmatpush3.bf16.msra.mxu0 %v1321_v25  ;;  %v1363_v19 = vld [vmem:[#allocation5 + $0x1b8] sm:$0xff]   ;;  %v1366_v25 = vld [vmem:[#allocation7 + $0x10] sm:$0xff]  }
  0x61   :  { %1176 = vmatpush3.bf16.msra.mxu1 %v1322_v26  ;;  %1155 = vmatprep.subr.bf16.mxu0 %v1323_v27  ;;  %v1367_v26 = vld [vmem:[#allocation7 + $0x18] sm:$0xff]   ;;  %v1368_v27 = vld [vmem:[#allocation7 + $0x20] sm:$0xff]  }
  0x62   :  { %1177 = vmatprep.subr.bf16.mxu1 %v1324_v28  ;;  %v1369_v28 = vld [vmem:[#allocation7 + $0x28] sm:$0xff]   ;;  %v1371_v30 = vld [vmem:[#allocation7 + $0x38] sm:$0xff]  }
  0x63   :  { %v1052_v39 = vld [vmem:[%s1658_s2] ss:$0 sm:$0xff] }
  0x64   :  { %1156 = vmatpush3.bf16.msra.mxu0 %v1325_v31  ;;  %v1372_v31 = vld [vmem:[#allocation8] sm:$0xff]  }
  0x65   :  { %1178 = vmatpush3.bf16.msra.mxu1 %v1326_v32  ;;  %1157 = vmatprep.subr.bf16.mxu0 %v1327_v33  ;;  %v1373_v32 = vld [vmem:[#allocation8 + $0x8] sm:$0xff]   ;;  %v1374_v33 = vld [vmem:[#allocation8 + $0x10] sm:$0xff]  }
  0x66   :  { %1179 = vmatprep.subr.bf16.mxu1 %v1328_v34  ;;  %v1375_v34 = vld [vmem:[#allocation8 + $0x18] sm:$0xff]  }
  0x68   :  { %1158 = vmatpush3.bf16.msra.mxu0 %v1329_v36  ;;  %v1377_v36 = vld [vmem:[#allocation8 + $0x28] sm:$0xff]  }
  0x69   :  { %1180 = vmatpush3.bf16.msra.mxu1 %v1330_v37  ;;  %1187 = vmatprep.subr.bf16.mxu0 %v1332_v41 }
  0x6a   :  { %1209 = vmatprep.subr.bf16.mxu1 %v1333_v42 }
  0x6b   :  { %681 = vmatmul.mubr.bf16.vlgmr.msra.gmra.mrb[0].mxu0 %v1053_v50 }
  0x6c   :  { %721 = vmatmul.mubr.bf16.vlgmr.msra.gmra.mrb[0].mxu1 %v1055_v51  ;;  %1188 = vmatpush3.bf16.msra.mxu0 %v1334_v45 }
  0x6d   :  { %1210 = vmatpush3.bf16.msra.mxu1 %v1335_v47  ;;  %1189 = vmatprep.subr.bf16.mxu0 %v1336_v52 }
  0x6e   :  { %1211 = vmatprep.subr.bf16.mxu1 %v1337_v53  ;;  %760 = vmatprep.mubr.bf16.mxu0 %v1058_v58 }
  0x6f   :  { %800 = vmatprep.mubr.bf16.mxu1 %v1060_v59 }
  0x70   :  { %1190 = vmatpush3.bf16.msra.mxu0 %v1338_v56 }
  0x71   :  { %1212 = vmatpush3.bf16.msra.mxu1 %v1339_v57  ;;  %1191 = vmatprep.subr.bf16.mxu0 %v1340_v60 }
  0x72   :  { %1213 = vmatprep.subr.bf16.mxu1 %v1341_v61 }
  0x74   :  { %1192 = vmatpush3.bf16.msra.mxu0 %v1342_v62 }
  0x75   :  { %1214 = vmatpush3.bf16.msra.mxu1 %v1343_v63  ;;  %1193 = vmatprep.subr.bf16.mxu0 %v1344_v0  ;;  %v1378_v0 = vld [vmem:[#allocation8 + $0x30] sm:$0xff]  }
  0x76   :  { %1215 = vmatprep.subr.bf16.mxu1 %v1345_v1  ;;  %v1379_v1 = vld [vmem:[#allocation8 + $0x38] sm:$0xff]  }
  0x78   :  { %1194 = vmatpush3.bf16.msra.mxu0 %v1346_v2  ;;  %v1125_v2 = vld [vmem:[%s1660_s4] ss:$0 sm:$0xff]  ;;  %s1468_s4 = scalar_lea.vmem %s1042_s29, 32 }
  0x79   :  { %1216 = vmatpush3.bf16.msra.mxu1 %v1347_v3  ;;  %1195 = vmatprep.subr.bf16.mxu0 %v1348_v4  ;;  %p1469_p4 = scmp.ne.s32.totalorder %s1042_s29, %s1468_s4  ;;  %p1474_p6 = scmp.lt.s32.totalorder %s1468_s4, %s1468_s4 }
  0x7a   :  { %1217 = vmatprep.subr.bf16.mxu1 %v1349_v5 }
  0x7b   :  { %p1475_p7 = por %p1474_p6, %p1473_p5 }
  0x7c   :  { %1196 = vmatpush3.bf16.msra.mxu0 %v1350_v6 }
  0x7d   :  { %1218 = vmatpush3.bf16.msra.mxu1 %v1351_v7  ;;  %1197 = vmatprep.subr.bf16.mxu0 %v1352_v8  ;;  %p1476_p8 = pnand %p1475_p7, %p1469_p4 }
  0x7e   :  { %1219 = vmatprep.subr.bf16.mxu1 %v1353_v9 }
  0x80   :  { %1198 = vmatpush3.bf16.msra.mxu0 %v1354_v10  ;;  %v1134_v10 = vld [vmem:[%s1662_s6] ss:$0 sm:$0xff] }
  0x81   :  { %1220 = vmatpush3.bf16.msra.mxu1 %v1355_v11  ;;  %1199 = vmatprep.subr.bf16.mxu0 %v1356_v12 }
  0x82   :  { %1221 = vmatprep.subr.bf16.mxu1 %v1357_v13 }
  0x84   :  { %1200 = vmatpush3.bf16.msra.mxu0 %v1358_v14 }
  0x85   :  { %1222 = vmatpush3.bf16.msra.mxu1 %v1359_v15  ;;  %1201 = vmatprep.subr.bf16.mxu0 %v1360_v16 }
  0x86   :  { %1223 = vmatprep.subr.bf16.mxu1 %v1361_v17 }
  0x88   :  { %1202 = vmatpush3.bf16.msra.mxu0 %v1362_v18 }
  0x89   :  { %1224 = vmatpush3.bf16.msra.mxu1 %v1363_v19  ;;  %1249 = vmatprep.subr.bf16.mxu0 %v1505_v23 }
  0x8a   :  { %1269 = vmatprep.subr.bf16.mxu1 %v1505_v23 }
  0x8b   :  { %761 = vmatmul.mubr.bf16.vlgmr.msra.gmra.mrb[4].mxu0 %v1057_v20 }
  0x8c   :  { %801 = vmatmul.mubr.bf16.vlgmr.msra.gmra.mrb[4].mxu1 %v1059_v21  ;;  %1250 = vmatpush3.bf16.msra.mxu0 %v1364_v22 }
  0x8d   :  { %1251 = vmatprep.subr.bf16.mxu0 %v1505_v23  ;;  %1265 = vmatprep.mubr.msk.bf16.mxu0 %vm1506_vm0, %v1505_v23 }
  0x8e   :  { %1285 = vmatprep.mubr.msk.bf16.mxu1 %vm1506_vm0, %v1505_v23  ;;  %1270 = vmatpush3.bf16.msra.mxu1 %v1372_v31 }
  0x8f   :  { %1271 = vmatprep.subr.bf16.mxu1 %v1505_v23 }
  0x90   :  { %1252 = vmatpush3.bf16.msra.mxu0 %v1365_v24 }
  0x91   :  { %1253 = vmatprep.subr.bf16.mxu0 %v1505_v23 }
  0x92   :  { %1272 = vmatpush3.bf16.msra.mxu1 %v1373_v32 }
  0x93   :  { %1273 = vmatprep.subr.bf16.mxu1 %v1505_v23 }
  0x94   :  { %1254 = vmatpush3.bf16.msra.mxu0 %v1366_v25 }
  0x95   :  { %1255 = vmatprep.subr.bf16.mxu0 %v1505_v23 }
  0x96   :  { %1274 = vmatpush3.bf16.msra.mxu1 %v1374_v33 }
  0x97   :  { %1275 = vmatprep.subr.bf16.mxu1 %v1505_v23 }
  0x98   :  { %1256 = vmatpush3.bf16.msra.mxu0 %v1367_v26 }
  0x99   :  { %1257 = vmatprep.subr.bf16.mxu0 %v1505_v23 }
  0x9a   :  { %1276 = vmatpush3.bf16.msra.mxu1 %v1375_v34 }
  0x9b   :  { %1277 = vmatprep.subr.bf16.mxu1 %v1505_v23 }
  0x9c   :  { %1258 = vmatpush3.bf16.msra.mxu0 %v1368_v27 }
  0x9d   :  { %1259 = vmatprep.subr.bf16.mxu0 %v1505_v23 }
  0x9e   :  { %1278 = vmatpush3.bf16.msra.mxu1 %v1376_v35 }
  0x9f   :  { %1279 = vmatprep.subr.bf16.mxu1 %v1505_v23 }
  0xa0   :  { %1260 = vmatpush3.bf16.msra.mxu0 %v1369_v28 }
  0xa1   :  { %1261 = vmatprep.subr.bf16.mxu0 %v1505_v23 }
  0xa2   :  { %1280 = vmatpush3.bf16.msra.mxu1 %v1377_v36 }
  0xa3   :  { %1281 = vmatprep.subr.bf16.mxu1 %v1505_v23 }
  0xa4   :  { %1262 = vmatpush3.bf16.msra.mxu0 %v1370_v29 }
  0xa5   :  { %1263 = vmatprep.subr.bf16.mxu0 %v1505_v23 }
  0xa6   :  { %1282 = vmatpush3.bf16.msra.mxu1 %v1378_v0 }
  0xa7   :  { %1283 = vmatprep.subr.bf16.mxu1 %v1505_v23 }
  0xa8   :  { %1264 = vmatpush3.bf16.msra.mxu0 %v1371_v30 }
  0xaa   :  { %1284 = vmatpush3.bf16.msra.mxu1 %v1379_v1 }
 0x13e   :  { %v1159_v37 = vpop.f32.mrb[0].mxu0 }
 0x13f   :  { %v1181_v38 = vpop.f32.mrb[0].mxu1  ;;  %v1160_v40 = vpop.f32.mrb[1].mxu0 }
 0x140   :  { %v1182_v41 = vpop.f32.mrb[1].mxu1  ;;  %v1161_v42 = vadd.f32 %v1160_v40, %v1159_v37  ;;  %v1162_v44 = vpop.f32.mrb[2].mxu0 }
 0x141   :  { %v1183_v43 = vadd.f32 %v1182_v41, %v1181_v38  ;;  %v1184_v45 = vpop.f32.mrb[2].mxu1  ;;  %v1163_v46 = vpop.f32.mrb[3].mxu0 }
 0x142   :  { %v1185_v47 = vpop.f32.mrb[3].mxu1  ;;  %v683_v48 = vadd.f32 %v1161_v42, %v1052_v39 }
 0x144   :  { %v723_v49 = vadd.f32 %v1183_v43, %v683_v48 }
 0x15e   :  { %v1203_v50 = vpop.f32.mrb[4].mxu0 }
 0x15f   :  { %v1225_v51 = vpop.f32.mrb[4].mxu1  ;;  %v1204_v52 = vpop.f32.mrb[5].mxu0 }
 0x160   :  { %v1226_v53 = vpop.f32.mrb[5].mxu1  ;;  %v1205_v54 = vadd.f32 %v1204_v52, %v1203_v50  ;;  %v1206_v56 = vpop.f32.mrb[6].mxu0 }
 0x161   :  { %v1227_v55 = vadd.f32 %v1226_v53, %v1225_v51  ;;  %v1228_v57 = vpop.f32.mrb[6].mxu1  ;;  %v1207_v58 = vpop.f32.mrb[7].mxu0 }
 0x162   :  { %v1229_v59 = vpop.f32.mrb[7].mxu1  ;;  %v763_v60 = vadd.f32 %v1205_v54, %v723_v49 }
 0x164   :  { %v803_v61 = vadd.f32 %v1227_v55, %v763_v60 }
 0x166   :  { %v808_v62 = vmax.f32 %v803_v61, 0.0 }
 0x168   :  { %v809_v63 = vpack.c.bf16 %v808_v62, %v808_v62 }
 0x16a   :  { %1266 = vmatmul.mubr.bf16.vlgmr.msra.gmra.mrb[8].mxu0 %v809_v63 }
 0x23d   :  { %v915_v3 = vpop.f32.mrb[8].mxu0 }
 0x23e   :  { %v916_v4 = vadd.f32 %v1125_v2, %v915_v3  ;;  %v1267_v5 = vpop.f32.mrb[9].mxu0 }
 0x23f   :  { %v918_v6 = vpop.f32.mrb[10].mxu0 }
 0x240   :  { %v921_v7 = vmax.f32 %v916_v4, 0.0  ;;  %v1268_v8 = vpop.f32.mrb[11].mxu0 }
 0x242   :  { %v922_v9 = vpack.c.bf16 %v921_v7, %v921_v7 }
 0x244   :  { %1286 = vmatmul.mubr.bf16.vlgmr.msra.gmra.mrb[8].mxu1 %v922_v9 }
 0x317   :  { %v1028_v11 = vpop.f32.mrb[8].mxu1 }
 0x318   :  { %v1029_v12 = vadd.f32 %v1134_v10, %v1028_v11  ;;  %v1287_v13 = vpop.f32.mrb[9].mxu1 }
 0x319   :  { %v1031_v14 = vpop.f32.mrb[10].mxu1 }
 0x31a   :  { %1034 = vst [vmem:[#allocation10] sm:$0x3] %v1029_v12  ;;  %v1288_v15 = vpop.f32.mrb[11].mxu1 }
 0x31b   :  { %1479 = shalt.err (!%p1476_p8)
}
 0x31c   :  { %s1480_s6 = scalar_lea.hbm %s1663_s7, 32 }
 0x31d   :  { %p1481_p9 = scmp.ne.s32.totalorder %s1663_s7, %s1480_s6  ;;  %p1484_p10 = scmp.lt.u32.totalorder %s1480_s6, %s1663_s7 }
 0x31f   :  { %p1486_p11 = pnand %p1484_p10, %p1481_p9 }
 0x321   :  { %1489 = shalt.err (!%p1486_p11)
}
 0x322   :  { %1044 = dma.vmem_to_hbm [thread:$0]  %s1042_s29, 32, %s1663_s7, [#allocation4]  }
 0x323   :  { %1496 = dma.done.wait [#allocation4], 32  }
 0x324   :  { %1497 = vsyncadd [#allocation4], 4294967264 }
 0x325   :  { %1048 = vsyncpa [#allocation3], 1 }
 0x326   :  { %1049 = vsyncpa [#allocation6], 1 }
 0x327   :  { %1050 = vsyncpa [#allocation9], 1 }
 0x328   :  { %1051 = vsyncpa [#allocation4], 1 }

</bundles_post_ra>
